<compile_context>
chip_gen: v7x
topology: tpu7x:2x2x1
jax: 0.10.0
libtpu: 0.0.40
codegen_flags: <defaults>
</compile_context>

<pallas_src>
import jax
import jax.numpy as jnp
from jax.experimental import pallas as pl
from jax.experimental.pallas import tpu as pltpu


# ------------------------------ Pallas kernels ------------------------------

def _epilogue(acc, par_ref):
    """Conv bias + LeakyReLU(0.2) + Dropout2d(eval) + BatchNorm2d(eval)."""
    bias, scale, shift = par_ref[0:1, :], par_ref[1:2, :], par_ref[2:3, :]
    z = acc + bias                                   # Conv2d bias
    z = jnp.where(z >= 0.0, z, 0.2 * z)              # LeakyReLU(0.2)
    # Dropout2d(0.25) is identity in eval; BN(eval, eps=0.8) folded into
    # scale/shift (identity for the bn=False first block).
    return z * scale + shift


def _conv_block_kernel(x_ref, w_ref, par_ref, o_ref):
    """One im2col row-block @ packed (9*Cin, Cout) weight + fused epilogue."""
    acc = jnp.dot(x_ref[...], w_ref[...], preferred_element_type=jnp.float32)
    o_ref[...] = _epilogue(acc, par_ref).astype(o_ref.dtype)


def _conv_head_kernel(x_ref, w_ref, par_ref, wh_ref, bh_ref, o_ref):
    """Last conv block with the adv head (Linear + Sigmoid) fused in."""
    acc = jnp.dot(x_ref[...], w_ref[...], preferred_element_type=jnp.float32)
    z = _epilogue(acc, par_ref)                      # (ds*ds, 128) f32 features
    # Linear(128*ds^2 -> 1) as multiply + full reduce (XLU), then Sigmoid.
    s = jnp.sum(z * wh_ref[...]) + bh_ref[...]       # (1, 1)
    o_ref[...] = (1.0 / (1.0 + jnp.exp(-s))).astype(o_ref.dtype)


# -------------------------------- JAX glue ----------------------------------

def _im2col_s2(x_nhwc):
    """(N,H,W,C) -> ((N*Ho*Wo, 9*C) stride-2/pad-1 im2col, (N, Ho, Wo)).

    Column order is (ky, kx) row-major, channel-minor — the same order as the
    packed (9*Cin, Cout) weight.  For a stride-2 3x3 conv this is only ~2.25x
    the activation size (each input pixel lands in at most 4 output windows).
    """
    N, H, W, C = x_nhwc.shape
    Ho, Wo = H // 2, W // 2
    xp = jnp.pad(x_nhwc, ((0, 0), (1, 1), (1, 1), (0, 0)))
    taps = [xp[:, ky:ky + 2 * Ho:2, kx:kx + 2 * Wo:2, :]
            for ky in range(3) for kx in range(3)]
    cols = jnp.concatenate(taps, axis=-1)            # (N, Ho, Wo, 9*C)
    return cols.reshape(N * Ho * Wo, 9 * C), (N, Ho, Wo)


def _pick_rows_block(total_rows, target=1024):
    """Largest power-of-two multiple of 8 that divides total_rows, <= target."""
    if total_rows <= target or total_rows % 8 != 0:
        return total_rows
    rb = 8
    while rb * 2 <= target and total_rows % (rb * 2) == 0:
        rb *= 2
    return rb


def _compiler_params():
    # Generation-aware VMEM budget: ~48 MiB on v7x (64 MiB physical VMEM),
    # 96 MiB on v5e/v6e (128 MiB physical).
    try:
        cap = getattr(pltpu.get_tpu_info(), "vmem_capacity_bytes",
                      64 * 1024 * 1024)
    except Exception:
        cap = 64 * 1024 * 1024
    return pltpu.CompilerParams(
        dimension_semantics=("parallel",),
        vmem_limit_bytes=min((3 * int(cap)) // 4, 96 * 1024 * 1024))


def _conv_block(cols, w, par, rows_block):
    """discriminator_block: Conv(3,s2,p1)+LeakyReLU+Dropout(eval)+[BN(eval)]."""
    rows, k = cols.shape
    cout = w.shape[1]
    return pl.pallas_call(
        _conv_block_kernel,
        out_shape=jax.ShapeDtypeStruct((rows, cout), jnp.bfloat16),
        grid=(rows // rows_block,),
        in_specs=[pl.BlockSpec((rows_block, k), lambda i: (i, 0)),
                  pl.BlockSpec((k, cout), lambda i: (0, 0)),       # resident
                  pl.BlockSpec((3, cout), lambda i: (0, 0))],      # resident
        out_specs=pl.BlockSpec((rows_block, cout), lambda i: (i, 0)),
        compiler_params=_compiler_params(),
    )(cols, w, par)


def _conv_head(cols3, w, par, w_head, b_head):
    """Last conv block fused with the adv head; returns (N, 1) validities."""
    n, m, k = cols3.shape
    cout = w.shape[1]
    out = pl.pallas_call(
        _conv_head_kernel,
        out_shape=jax.ShapeDtypeStruct((n, 1, 1), jnp.float32),
        grid=(n,),
        in_specs=[pl.BlockSpec((None, m, k), lambda i: (i, 0, 0)),
                  pl.BlockSpec((k, cout), lambda i: (0, 0)),       # resident
                  pl.BlockSpec((3, cout), lambda i: (0, 0)),       # resident
                  pl.BlockSpec((m, cout), lambda i: (0, 0)),       # resident
                  pl.BlockSpec((1, 1), lambda i: (0, 0))],
        out_specs=pl.BlockSpec((None, 1, 1), lambda i: (i, 0, 0)),
        compiler_params=_compiler_params(),
    )(cols3, w, par, w_head, b_head)
    return out.reshape(n, 1)


def init_params(key, channels, img_size):
    """Synthetic parameters in PyTorch layout + pre-packed kernel layout."""
    keys = jax.random.split(key, 16)
    layer_cfg = [(channels, 16, False), (16, 32, True), (32, 64, True), (64, 128, True)]
    eps = 0.8                        # nn.BatchNorm2d(out_filters, 0.8) -> eps = 0.8
    torch_layers, kernel_layers = [], []
    ki = 0
    for cin, cout, bn in layer_cfg:
        w = 0.1 * jax.random.normal(keys[ki], (cout, cin, 3, 3), jnp.float32); ki += 1
        b = 0.1 * jax.random.normal(keys[ki], (cout,), jnp.float32); ki += 1
        if bn:
            gamma = 1.0 + 0.1 * jax.random.normal(keys[ki], (cout,), jnp.float32); ki += 1
            beta = 0.1 * jax.random.normal(keys[ki], (cout,), jnp.float32); ki += 1
            running_mean = jnp.zeros((cout,), jnp.float32)
            running_var = jnp.ones((cout,), jnp.float32)
            scale = gamma / jnp.sqrt(running_var + eps)
            shift = beta - running_mean * scale
        else:
            scale = jnp.ones((cout,), jnp.float32)
            shift = jnp.zeros((cout,), jnp.float32)
        torch_layers.append((w, b, scale, shift))
        # torch (Cout, Cin, 3, 3) -> (ky, kx, Cin, Cout) -> packed (9*Cin, Cout),
        # matching the im2col (ky, kx, cin) column order.
        wk = jnp.transpose(w, (2, 3, 1, 0)).reshape(9 * cin, cout)
        par = jnp.stack([b, scale, shift], axis=0)                 # (3, Cout) f32
        kernel_layers.append((wk.astype(jnp.bfloat16), par))

    ds = img_size // 2 ** 4
    feat_dim = 128 * ds * ds
    wl = 0.05 * jax.random.normal(keys[ki], (1, feat_dim), jnp.float32); ki += 1
    bl = 0.05 * jax.random.normal(keys[ki], (1,), jnp.float32)
    # Permute head weight rows once: torch (c, h, w) flatten -> NHWC (h, w, c)
    # order produced by the conv stack, so no runtime feature-map transpose.
    w_head = jnp.transpose(wl.reshape(128, ds, ds), (1, 2, 0)).reshape(ds * ds, 128)
    return ((kernel_layers, (w_head, bl.reshape(1, 1))),
            (torch_layers, (wl, bl)))


@jax.jit
def discriminator_forward(img_nchw, params, head):
    # NCHW -> NHWC, bf16 activations (f32 accumulation inside the kernels).
    x = jnp.transpose(img_nchw, (0, 2, 3, 1)).astype(jnp.bfloat16)
    for wk, par in params[:-1]:
        cols, (n, ho, wo) = _im2col_s2(x)
        y = _conv_block(cols, wk, par, _pick_rows_block(cols.shape[0]))
        x = y.reshape(n, ho, wo, wk.shape[1])
    # Last conv block fused with the adv head (Linear + Sigmoid).
    wk, par = params[-1]
    cols, (n, ho, wo) = _im2col_s2(x)
    cols3 = cols.reshape(n, ho * wo, cols.shape[1])
    return _conv_head(cols3, wk, par, head[0], head[1])


def _reference_forward(img_nchw, torch_layers, torch_head):
    """Pure-JAX f32 reference matching the PyTorch module (eval mode)."""
    x = img_nchw.astype(jnp.float32)
    for w, b, scale, shift in torch_layers:
        x = jax.lax.conv_general_dilated(
            x, w, window_strides=(2, 2), padding=((1, 1), (1, 1)),
            dimension_numbers=("NCHW", "OIHW", "NCHW"))
        x = x + b[None, :, None, None]
        x = jnp.where(x >= 0.0, x, 0.2 * x)
        x = x * scale[None, :, None, None] + shift[None, :, None, None]
    feat = x.reshape(x.shape[0], -1)                  # NCHW flatten, like torch
    wl, bl = torch_head
    return 1.0 / (1.0 + jnp.exp(-(feat @ wl.T + bl)))


if __name__ == "__main__":
    key = jax.random.PRNGKey(0)
    k_img, k_par = jax.random.split(key)

    batch, channels, img_size = 2, 4, 16              # img_size divisible by 16
    img = jax.random.normal(k_img, (batch, channels, img_size, img_size),
                            jnp.float32)

    (kparams, khead), (tparams, thead) = init_params(k_par, channels, img_size)

    out = discriminator_forward(img, kparams, khead)
    out = jax.block_until_ready(out)

    ref = _reference_forward(img, tparams, thead)

    assert out.shape == (batch, 1)
    assert bool(jnp.all(jnp.isfinite(out)))
    assert bool(jnp.all((out >= 0.0) & (out <= 1.0)))            # post-sigmoid
    assert float(jnp.max(jnp.abs(out - ref))) < 5e-2             # bf16 tolerance
    print("KERNEL_OK")
</pallas_src>

<mosaic_0001>
module attributes {stable_mosaic.version = 11 : i64} {
  func.func @_conv_block_kernel(%arg0: i32, %arg1: memref<128x36xbf16, #tpu.memory_space<vmem>>, %arg2: memref<36x16xbf16, #tpu.memory_space<vmem>>, %arg3: memref<3x16xf32, #tpu.memory_space<vmem>>, %arg4: memref<128x16xbf16, #tpu.memory_space<vmem>>) attributes {dimension_semantics = [#tpu.dimension_semantics<parallel>], iteration_bounds = array<i64: 1>, scalar_prefetch = 0 : i64, scratch_operands = 0 : i64, tpu.core_type = #tpu.core_type<tc>, window_params = [{transform_indices = @transform_0, window_bounds = array<i64: 128, 36>}, {pipeline_mode = #tpu.pipeline_mode<synchronous>, transform_indices = @transform_1, window_bounds = array<i64: 36, 16>}, {pipeline_mode = #tpu.pipeline_mode<synchronous>, transform_indices = @transform_2, window_bounds = array<i64: 3, 16>}, {transform_indices = @transform_3, window_bounds = array<i64: 128, 16>}]} {
    %c0 = arith.constant 0 : index
    %c0_0 = arith.constant 0 : index
    %0 = vector.load %arg1[%c0, %c0_0] : memref<128x36xbf16, #tpu.memory_space<vmem>>, vector<128x36xbf16>
    %c0_1 = arith.constant 0 : index
    %c0_2 = arith.constant 0 : index
    %1 = vector.load %arg2[%c0_1, %c0_2] : memref<36x16xbf16, #tpu.memory_space<vmem>>, vector<36x16xbf16>
    %cst = arith.constant dense<0.000000e+00> : vector<128x16xf32>
    %2 = tpu.matmul %0, %1, %cst {dimension_numbers = #tpu.dot_dimension_numbers<[1], [0], [0], [1], [0, 0, 1, 1], [], []>} : vector<128x36xbf16>, vector<36x16xbf16>, vector<128x16xf32> -> vector<128x16xf32>
    %c0_3 = arith.constant 0 : index
    %c0_4 = arith.constant 0 : index
    %3 = vector.load %arg3[%c0_3, %c0_4] : memref<3x16xf32, #tpu.memory_space<vmem>>, vector<1x16xf32>
    %c1 = arith.constant 1 : index
    %c0_5 = arith.constant 0 : index
    %4 = vector.load %arg3[%c1, %c0_5] : memref<3x16xf32, #tpu.memory_space<vmem>>, vector<1x16xf32>
    %c2 = arith.constant 2 : index
    %c0_6 = arith.constant 0 : index
    %5 = vector.load %arg3[%c2, %c0_6] : memref<3x16xf32, #tpu.memory_space<vmem>>, vector<1x16xf32>
    %6 = vector.broadcast %3 : vector<1x16xf32> to vector<128x16xf32>
    %7 = arith.addf %2, %6 : vector<128x16xf32>
    %cst_7 = arith.constant 0.000000e+00 : f32
    %8 = vector.broadcast %cst_7 : f32 to vector<128x16xf32>
    %9 = arith.cmpf oge, %7, %8 : vector<128x16xf32>
    %cst_8 = arith.constant 2.000000e-01 : f32
    %10 = vector.broadcast %cst_8 : f32 to vector<128x16xf32>
    %11 = arith.mulf %10, %7 : vector<128x16xf32>
    %12 = arith.select %9, %7, %11 : vector<128x16xi1>, vector<128x16xf32>
    %13 = vector.broadcast %4 : vector<1x16xf32> to vector<128x16xf32>
    %14 = arith.mulf %12, %13 : vector<128x16xf32>
    %15 = vector.broadcast %5 : vector<1x16xf32> to vector<128x16xf32>
    %16 = arith.addf %14, %15 : vector<128x16xf32>
    %17 = arith.truncf %16 : vector<128x16xf32> to vector<128x16xbf16>
    %c0_9 = arith.constant 0 : index
    %c0_10 = arith.constant 0 : index
    %18 = vector.load %arg4[%c0_9, %c0_10] : memref<128x16xbf16, #tpu.memory_space<vmem>>, vector<128x16xbf16>
    tpu.vector_store %arg4[%c0_9, %c0_10], %17 {strides = array<i32>} : memref<128x16xbf16, #tpu.memory_space<vmem>>, vector<128x16xbf16>,
    return
  }
  func.func @transform_0(%arg0: i32) -> (i32, i32) {
    %c0_i32 = arith.constant 0 : i32
    %c0_i32_0 = arith.constant 0 : i32
    return %arg0, %c0_i32 : i32, i32
  }
  func.func @transform_1(%arg0: i32) -> (i32, i32) {
    %c0_i32 = arith.constant 0 : i32
    %c0_i32_0 = arith.constant 0 : i32
    %c0_i32_1 = arith.constant 0 : i32
    return %c0_i32, %c0_i32_0 : i32, i32
  }
  func.func @transform_2(%arg0: i32) -> (i32, i32) {
    %c0_i32 = arith.constant 0 : i32
    %c0_i32_0 = arith.constant 0 : i32
    %c0_i32_1 = arith.constant 0 : i32
    return %c0_i32, %c0_i32_0 : i32, i32
  }
  func.func @transform_3(%arg0: i32) -> (i32, i32) {
    %c0_i32 = arith.constant 0 : i32
    %c0_i32_0 = arith.constant 0 : i32
    return %arg0, %c0_i32 : i32, i32
  }
}

module attributes {stable_mosaic.version = 11 : i64} {
  func.func @_conv_block_kernel(%arg0: i32, %arg1: memref<32x144xbf16, #tpu.memory_space<vmem>>, %arg2: memref<144x32xbf16, #tpu.memory_space<vmem>>, %arg3: memref<3x32xf32, #tpu.memory_space<vmem>>, %arg4: memref<32x32xbf16, #tpu.memory_space<vmem>>) attributes {dimension_semantics = [#tpu.dimension_semantics<parallel>], iteration_bounds = array<i64: 1>, scalar_prefetch = 0 : i64, scratch_operands = 0 : i64, tpu.core_type = #tpu.core_type<tc>, window_params = [{transform_indices = @transform_0, window_bounds = array<i64: 32, 144>}, {pipeline_mode = #tpu.pipeline_mode<synchronous>, transform_indices = @transform_1, window_bounds = array<i64: 144, 32>}, {pipeline_mode = #tpu.pipeline_mode<synchronous>, transform_indices = @transform_2, window_bounds = array<i64: 3, 32>}, {transform_indices = @transform_3, window_bounds = array<i64: 32, 32>}]} {
    %c0 = arith.constant 0 : index
    %c0_0 = arith.constant 0 : index
    %0 = vector.load %arg1[%c0, %c0_0] : memref<32x144xbf16, #tpu.memory_space<vmem>>, vector<32x144xbf16>
    %c0_1 = arith.constant 0 : index
    %c0_2 = arith.constant 0 : index
    %1 = vector.load %arg2[%c0_1, %c0_2] : memref<144x32xbf16, #tpu.memory_space<vmem>>, vector<144x32xbf16>
    %cst = arith.constant dense<0.000000e+00> : vector<32x32xf32>
    %2 = tpu.matmul %0, %1, %cst {dimension_numbers = #tpu.dot_dimension_numbers<[1], [0], [0], [1], [0, 0, 1, 1], [], []>} : vector<32x144xbf16>, vector<144x32xbf16>, vector<32x32xf32> -> vector<32x32xf32>
    %c0_3 = arith.constant 0 : index
    %c0_4 = arith.constant 0 : index
    %3 = vector.load %arg3[%c0_3, %c0_4] : memref<3x32xf32, #tpu.memory_space<vmem>>, vector<1x32xf32>
    %c1 = arith.constant 1 : index
    %c0_5 = arith.constant 0 : index
    %4 = vector.load %arg3[%c1, %c0_5] : memref<3x32xf32, #tpu.memory_space<vmem>>, vector<1x32xf32>
    %c2 = arith.constant 2 : index
    %c0_6 = arith.constant 0 : index
    %5 = vector.load %arg3[%c2, %c0_6] : memref<3x32xf32, #tpu.memory_space<vmem>>, vector<1x32xf32>
    %6 = vector.broadcast %3 : vector<1x32xf32> to vector<32x32xf32>
    %7 = arith.addf %2, %6 : vector<32x32xf32>
    %cst_7 = arith.constant 0.000000e+00 : f32
    %8 = vector.broadcast %cst_7 : f32 to vector<32x32xf32>
    %9 = arith.cmpf oge, %7, %8 : vector<32x32xf32>
    %cst_8 = arith.constant 2.000000e-01 : f32
    %10 = vector.broadcast %cst_8 : f32 to vector<32x32xf32>
    %11 = arith.mulf %10, %7 : vector<32x32xf32>
    %12 = arith.select %9, %7, %11 : vector<32x32xi1>, vector<32x32xf32>
    %13 = vector.broadcast %4 : vector<1x32xf32> to vector<32x32xf32>
    %14 = arith.mulf %12, %13 : vector<32x32xf32>
    %15 = vector.broadcast %5 : vector<1x32xf32> to vector<32x32xf32>
    %16 = arith.addf %14, %15 : vector<32x32xf32>
    %17 = arith.truncf %16 : vector<32x32xf32> to vector<32x32xbf16>
    %c0_9 = arith.constant 0 : index
    %c0_10 = arith.constant 0 : index
    %18 = vector.load %arg4[%c0_9, %c0_10] : memref<32x32xbf16, #tpu.memory_space<vmem>>, vector<32x32xbf16>
    tpu.vector_store %arg4[%c0_9, %c0_10], %17 {strides = array<i32>} : memref<32x32xbf16, #tpu.memory_space<vmem>>, vector<32x32xbf16>,
    return
  }
  func.func @transform_0(%arg0: i32) -> (i32, i32) {
    %c0_i32 = arith.constant 0 : i32
    %c0_i32_0 = arith.constant 0 : i32
    return %arg0, %c0_i32 : i32, i32
  }
  func.func @transform_1(%arg0: i32) -> (i32, i32) {
    %c0_i32 = arith.constant 0 : i32
    %c0_i32_0 = arith.constant 0 : i32
    %c0_i32_1 = arith.constant 0 : i32
    return %c0_i32, %c0_i32_0 : i32, i32
  }
  func.func @transform_2(%arg0: i32) -> (i32, i32) {
    %c0_i32 = arith.constant 0 : i32
    %c0_i32_0 = arith.constant 0 : i32
    %c0_i32_1 = arith.constant 0 : i32
    return %c0_i32, %c0_i32_0 : i32, i32
  }
  func.func @transform_3(%arg0: i32) -> (i32, i32) {
    %c0_i32 = arith.constant 0 : i32
    %c0_i32_0 = arith.constant 0 : i32
    return %arg0, %c0_i32 : i32, i32
  }
}

module attributes {stable_mosaic.version = 11 : i64} {
  func.func @_conv_head_kernel(%arg0: i32, %arg1: memref<1x1x576xbf16, #tpu.memory_space<vmem>>, %arg2: memref<576x128xbf16, #tpu.memory_space<vmem>>, %arg3: memref<3x128xf32, #tpu.memory_space<vmem>>, %arg4: memref<1x128xf32, #tpu.memory_space<vmem>>, %arg5: memref<1x1xf32, #tpu.memory_space<vmem>>, %arg6: memref<1x1x1xf32, #tpu.memory_space<vmem>>) attributes {dimension_semantics = [#tpu.dimension_semantics<parallel>], iteration_bounds = array<i64: 2>, scalar_prefetch = 0 : i64, scratch_operands = 0 : i64, tpu.core_type = #tpu.core_type<tc>, window_params = [{transform_indices = @transform_0, window_bounds = array<i64: 1, 1, 576>}, {pipeline_mode = #tpu.pipeline_mode<synchronous>, transform_indices = @transform_1, window_bounds = array<i64: 576, 128>}, {pipeline_mode = #tpu.pipeline_mode<synchronous>, transform_indices = @transform_2, window_bounds = array<i64: 3, 128>}, {pipeline_mode = #tpu.pipeline_mode<synchronous>, transform_indices = @transform_3, window_bounds = array<i64: 1, 128>}, {pipeline_mode = #tpu.pipeline_mode<synchronous>, transform_indices = @transform_4, window_bounds = array<i64: 1, 1>}, {transform_indices = @transform_5, window_bounds = array<i64: 1, 1, 1>}]} {
    %c0 = arith.constant 0 : index
    %c0_0 = arith.constant 0 : index
    %c0_1 = arith.constant 0 : index
    %0 = vector.load %arg1[%c0, %c0_0, %c0_1] : memref<1x1x576xbf16, #tpu.memory_space<vmem>>, vector<1x1x576xbf16>
    %1 = vector.shape_cast %0 : vector<1x1x576xbf16> to vector<1x576xbf16>
    %c0_2 = arith.constant 0 : index
    %c0_3 = arith.constant 0 : index
    %2 = vector.load %arg2[%c0_2, %c0_3] : memref<576x128xbf16, #tpu.memory_space<vmem>>, vector<576x128xbf16>
    %cst = arith.constant dense<0.000000e+00> : vector<1x128xf32>
    %3 = tpu.matmul %1, %2, %cst {dimension_numbers = #tpu.dot_dimension_numbers<[1], [0], [0], [1], [0, 0, 1, 1], [], []>} : vector<1x576xbf16>, vector<576x128xbf16>, vector<1x128xf32> -> vector<1x128xf32>
    %c0_4 = arith.constant 0 : index
    %c0_5 = arith.constant 0 : index
    %4 = vector.load %arg3[%c0_4, %c0_5] : memref<3x128xf32, #tpu.memory_space<vmem>>, vector<1x128xf32>
    %c1 = arith.constant 1 : index
    %c0_6 = arith.constant 0 : index
    %5 = vector.load %arg3[%c1, %c0_6] : memref<3x128xf32, #tpu.memory_space<vmem>>, vector<1x128xf32>
    %c2 = arith.constant 2 : index
    %c0_7 = arith.constant 0 : index
    %6 = vector.load %arg3[%c2, %c0_7] : memref<3x128xf32, #tpu.memory_space<vmem>>, vector<1x128xf32>
    %7 = arith.addf %3, %4 : vector<1x128xf32>
    %cst_8 = arith.constant 0.000000e+00 : f32
    %8 = vector.broadcast %cst_8 : f32 to vector<1x128xf32>
    %9 = arith.cmpf oge, %7, %8 : vector<1x128xf32>
    %cst_9 = arith.constant 2.000000e-01 : f32
    %10 = vector.broadcast %cst_9 : f32 to vector<1x128xf32>
    %11 = arith.mulf %10, %7 : vector<1x128xf32>
    %12 = arith.select %9, %7, %11 : vector<1x128xi1>, vector<1x128xf32>
    %13 = arith.mulf %12, %5 : vector<1x128xf32>
    %14 = arith.addf %13, %6 : vector<1x128xf32>
    %c0_10 = arith.constant 0 : index
    %c0_11 = arith.constant 0 : index
    %15 = vector.load %arg4[%c0_10, %c0_11] : memref<1x128xf32, #tpu.memory_space<vmem>>, vector<1x128xf32>
    %16 = arith.mulf %14, %15 : vector<1x128xf32>
    %17 = vector.shape_cast %16 : vector<1x128xf32> to vector<1x1x128xf32>
    %cst_12 = arith.constant dense<0.000000e+00> : vector<1xf32>
    %18 = vector.multi_reduction <add>, %17, %cst_12 [1, 2] : vector<1x1x128xf32> to vector<1xf32>
    %19 = vector.shape_cast %18 : vector<1xf32> to vector<1x1x1xf32>
    %20 = vector.extract %19[0, 0, 0] : f32 from vector<1x1x1xf32>
    %c0_13 = arith.constant 0 : index
    %c0_14 = arith.constant 0 : index
    %21 = vector.load %arg5[%c0_13, %c0_14] : memref<1x1xf32, #tpu.memory_space<vmem>>, vector<1x1xf32>
    %22 = vector.broadcast %20 : f32 to vector<1x1xf32>
    %23 = arith.addf %22, %21 : vector<1x1xf32>
    %cst_15 = arith.constant 0.000000e+00 : f32
    %24 = vector.broadcast %cst_15 : f32 to vector<1x1xf32>
    %25 = arith.subf %24, %23 : vector<1x1xf32>
    %26 = math.exp %25 : vector<1x1xf32>
    %cst_16 = arith.constant 1.000000e+00 : f32
    %27 = vector.broadcast %cst_16 : f32 to vector<1x1xf32>
    %28 = arith.addf %27, %26 : vector<1x1xf32>
    %cst_17 = arith.constant 1.000000e+00 : f32
    %29 = vector.broadcast %cst_17 : f32 to vector<1x1xf32>
    %30 = arith.divf %29, %28 : vector<1x1xf32>
    %c0_18 = arith.constant 0 : index
    %c0_19 = arith.constant 0 : index
    %c0_20 = arith.constant 0 : index
    %31 = vector.load %arg6[%c0_18, %c0_19, %c0_20] : memref<1x1x1xf32, #tpu.memory_space<vmem>>, vector<1x1x1xf32>
    %32 = vector.shape_cast %31 : vector<1x1x1xf32> to vector<1x1xf32>
    %33 = vector.shape_cast %30 : vector<1x1xf32> to vector<1x1x1xf32>
    tpu.vector_store %arg6[%c0_18, %c0_19, %c0_20], %33 {strides = array<i32>} : memref<1x1x1xf32, #tpu.memory_space<vmem>>, vector<1x1x1xf32>,
    return
  }
  func.func @transform_0(%arg0: i32) -> (i32, i32, i32) {
    %c0_i32 = arith.constant 0 : i32
    %c0_i32_0 = arith.constant 0 : i32
    %c0_i32_1 = arith.constant 0 : i32
    return %arg0, %c0_i32, %c0_i32_0 : i32, i32, i32
  }
  func.func @transform_1(%arg0: i32) -> (i32, i32) {
    %c0_i32 = arith.constant 0 : i32
    %c0_i32_0 = arith.constant 0 : i32
    %c0_i32_1 = arith.constant 0 : i32
    return %c0_i32, %c0_i32_0 : i32, i32
  }
  func.func @transform_2(%arg0: i32) -> (i32, i32) {
    %c0_i32 = arith.constant 0 : i32
    %c0_i32_0 = arith.constant 0 : i32
    %c0_i32_1 = arith.constant 0 : i32
    return %c0_i32, %c0_i32_0 : i32, i32
  }
  func.func @transform_3(%arg0: i32) -> (i32, i32) {
    %c0_i32 = arith.constant 0 : i32
    %c0_i32_0 = arith.constant 0 : i32
    %c0_i32_1 = arith.constant 0 : i32
    return %c0_i32, %c0_i32_0 : i32, i32
  }
  func.func @transform_4(%arg0: i32) -> (i32, i32) {
    %c0_i32 = arith.constant 0 : i32
    %c0_i32_0 = arith.constant 0 : i32
    %c0_i32_1 = arith.constant 0 : i32
    return %c0_i32, %c0_i32_0 : i32, i32
  }
  func.func @transform_5(%arg0: i32) -> (i32, i32, i32) {
    %c0_i32 = arith.constant 0 : i32
    %c0_i32_0 = arith.constant 0 : i32
    %c0_i32_1 = arith.constant 0 : i32
    return %arg0, %c0_i32, %c0_i32_0 : i32, i32, i32
  }
}

module attributes {stable_mosaic.version = 11 : i64} {
  func.func @_conv_block_kernel(%arg0: i32, %arg1: memref<8x288xbf16, #tpu.memory_space<vmem>>, %arg2: memref<288x64xbf16, #tpu.memory_space<vmem>>, %arg3: memref<3x64xf32, #tpu.memory_space<vmem>>, %arg4: memref<8x64xbf16, #tpu.memory_space<vmem>>) attributes {dimension_semantics = [#tpu.dimension_semantics<parallel>], iteration_bounds = array<i64: 1>, scalar_prefetch = 0 : i64, scratch_operands = 0 : i64, tpu.core_type = #tpu.core_type<tc>, window_params = [{transform_indices = @transform_0, window_bounds = array<i64: 8, 288>}, {pipeline_mode = #tpu.pipeline_mode<synchronous>, transform_indices = @transform_1, window_bounds = array<i64: 288, 64>}, {pipeline_mode = #tpu.pipeline_mode<synchronous>, transform_indices = @transform_2, window_bounds = array<i64: 3, 64>}, {transform_indices = @transform_3, window_bounds = array<i64: 8, 64>}]} {
    %c0 = arith.constant 0 : index
    %c0_0 = arith.constant 0 : index
    %0 = vector.load %arg1[%c0, %c0_0] : memref<8x288xbf16, #tpu.memory_space<vmem>>, vector<8x288xbf16>
    %c0_1 = arith.constant 0 : index
    %c0_2 = arith.constant 0 : index
    %1 = vector.load %arg2[%c0_1, %c0_2] : memref<288x64xbf16, #tpu.memory_space<vmem>>, vector<288x64xbf16>
    %cst = arith.constant dense<0.000000e+00> : vector<8x64xf32>
    %2 = tpu.matmul %0, %1, %cst {dimension_numbers = #tpu.dot_dimension_numbers<[1], [0], [0], [1], [0, 0, 1, 1], [], []>} : vector<8x288xbf16>, vector<288x64xbf16>, vector<8x64xf32> -> vector<8x64xf32>
    %c0_3 = arith.constant 0 : index
    %c0_4 = arith.constant 0 : index
    %3 = vector.load %arg3[%c0_3, %c0_4] : memref<3x64xf32, #tpu.memory_space<vmem>>, vector<1x64xf32>
    %c1 = arith.constant 1 : index
    %c0_5 = arith.constant 0 : index
    %4 = vector.load %arg3[%c1, %c0_5] : memref<3x64xf32, #tpu.memory_space<vmem>>, vector<1x64xf32>
    %c2 = arith.constant 2 : index
    %c0_6 = arith.constant 0 : index
    %5 = vector.load %arg3[%c2, %c0_6] : memref<3x64xf32, #tpu.memory_space<vmem>>, vector<1x64xf32>
    %6 = vector.broadcast %3 : vector<1x64xf32> to vector<8x64xf32>
    %7 = arith.addf %2, %6 : vector<8x64xf32>
    %cst_7 = arith.constant 0.000000e+00 : f32
    %8 = vector.broadcast %cst_7 : f32 to vector<8x64xf32>
    %9 = arith.cmpf oge, %7, %8 : vector<8x64xf32>
    %cst_8 = arith.constant 2.000000e-01 : f32
    %10 = vector.broadcast %cst_8 : f32 to vector<8x64xf32>
    %11 = arith.mulf %10, %7 : vector<8x64xf32>
    %12 = arith.select %9, %7, %11 : vector<8x64xi1>, vector<8x64xf32>
    %13 = vector.broadcast %4 : vector<1x64xf32> to vector<8x64xf32>
    %14 = arith.mulf %12, %13 : vector<8x64xf32>
    %15 = vector.broadcast %5 : vector<1x64xf32> to vector<8x64xf32>
    %16 = arith.addf %14, %15 : vector<8x64xf32>
    %17 = arith.truncf %16 : vector<8x64xf32> to vector<8x64xbf16>
    %c0_9 = arith.constant 0 : index
    %c0_10 = arith.constant 0 : index
    %18 = vector.load %arg4[%c0_9, %c0_10] : memref<8x64xbf16, #tpu.memory_space<vmem>>, vector<8x64xbf16>
    tpu.vector_store %arg4[%c0_9, %c0_10], %17 {strides = array<i32>} : memref<8x64xbf16, #tpu.memory_space<vmem>>, vector<8x64xbf16>,
    return
  }
  func.func @transform_0(%arg0: i32) -> (i32, i32) {
    %c0_i32 = arith.constant 0 : i32
    %c0_i32_0 = arith.constant 0 : i32
    return %arg0, %c0_i32 : i32, i32
  }
  func.func @transform_1(%arg0: i32) -> (i32, i32) {
    %c0_i32 = arith.constant 0 : i32
    %c0_i32_0 = arith.constant 0 : i32
    %c0_i32_1 = arith.constant 0 : i32
    return %c0_i32, %c0_i32_0 : i32, i32
  }
  func.func @transform_2(%arg0: i32) -> (i32, i32) {
    %c0_i32 = arith.constant 0 : i32
    %c0_i32_0 = arith.constant 0 : i32
    %c0_i32_1 = arith.constant 0 : i32
    return %c0_i32, %c0_i32_0 : i32, i32
  }
  func.func @transform_3(%arg0: i32) -> (i32, i32) {
    %c0_i32 = arith.constant 0 : i32
    %c0_i32_0 = arith.constant 0 : i32
    return %arg0, %c0_i32 : i32, i32
  }
}

</mosaic_0001>

<bundles_post_ra>
// kernel: discriminator_forward.4
= control target key start
LH: loop header
LB: loop body
LE: loop exit
PB: predicated region body
PF: predicated region fallthrough
CT: control target
= control target key end

     0   :  { %vm98_vm0 = vcmask 293888   ;;  %vm123_vm1 = vcmask 1041408   ;;  %vm376_vm2 = vcmask 125952   ;;  %s692_s1 = inlined_call_operand.vmem [shape: bf16[36,16], index: 1, kind: input, shape index: {}]   ;;  %s693_s0 = inlined_call_operand.vmem [shape: bf16[128,36], index: 0, kind: input, shape index: {}]   ;;  %s694_s2 = inlined_call_operand.vmem [shape: f32[3,16], index: 2, kind: input, shape index: {}]   ;;  %s695_s3 = inlined_call_operand.vmem [shape: bf16[128,16], index: 3, kind: output, shape index: {}]  }
   0x1   :  { %v492_v0 = vld [vmem:[%s692_s1] sm:$0xff]   ;;  %v493_v1 = vld [vmem:[%s692_s1 + $0x8] sm:$0xff]   ;;  %v494_v2 = vld [vmem:[%s692_s1 + $0x10] ss:$0 sps:$4 sm:$0x33]  }
   0x2   :  { %462 = vmatprep.subr.bf16.mxu0 %v492_v0  ;;  %484 = vmatprep.subr.bf16.mxu1 %v492_v0  ;;  %v495_v3 = vld [vmem:[%s693_s0] sm:$0xff]   ;;  %v125_v5 = vsel %vm123_vm1, %v494_v2, 0  ;;  %v497_v6 = vld [vmem:[%s693_s0 + $0x8] sm:$0xff]   ;;  %v499_v8 = vld [vmem:[%s693_s0 + $0x10] sm:$0xff]  }
   0x3   :  { %463 = vmatpush3.bf16.msra.mxu0 %v492_v0  ;;  %487 = vmatpush3.bf16.msra.mxu1 %v492_v0  ;;  %v496_v4 = vld [vmem:[%s693_s0 + $0x20] sm:$0xff]   ;;  %v498_v7 = vld [vmem:[%s693_s0 + $0x28] sm:$0xff]   ;;  %v500_v9 = vld [vmem:[%s693_s0 + $0x30] sm:$0xff]  }
   0x4   :  { %464 = vmatprep.subr.bf16.mxu0 %v493_v1  ;;  %485 = vmatprep.subr.bf16.mxu1 %v493_v1  ;;  %v501_v10 = vld [vmem:[%s693_s0 + $0x18] sm:$0xff]   ;;  %v567_v12 = vld [vmem:[%s694_s2] ss:$0 sm:$0xff]  ;;  %v574_v19 = vld [vmem:[%s694_s2 + $0x1] ss:$0 sm:$0xff] }
   0x5   :  { %468 = vmatprep.mubr.msk.bf16.mxu0 %vm98_vm0, %v495_v3  ;;  %476 = vmatprep.mubr.msk.bf16.mxu1 %vm98_vm0, %v496_v4  ;;  %v502_v11 = vld [vmem:[%s693_s0 + $0x38] sm:$0xff]   ;;  %v581_v28 = vld [vmem:[%s694_s2 + $0x2] ss:$0 sm:$0xff] }
   0x7   :  { %465 = vmatpush3.bf16.msra.mxu0 %v493_v1  ;;  %488 = vmatpush3.bf16.msra.mxu1 %v493_v1 }
   0x8   :  { %490 = vmatprep.subr.msk.bf16.mxu0 %vm123_vm1, %v494_v2  ;;  %491 = vmatprep.subr.msk.bf16.mxu1 %vm123_vm1, %v494_v2 }
   0xb   :  { %467 = vmatpush3.bf16.msra.mxu0 %v125_v5  ;;  %489 = vmatpush3.bf16.msra.mxu1 %v125_v5 }
   0xe   :  { %469 = vmatmul.mubr.msk.bf16.vlgmr.msra.gmra.mrb[0].mxu0 %vm98_vm0, %v497_v6  ;;  %477 = vmatmul.mubr.msk.bf16.vlgmr.msra.gmra.mrb[0].mxu1 %vm98_vm0, %v498_v7 }
   0xf   :  { %472 = vmatprep.mubr.msk.bf16.mxu0 %vm98_vm0, %v499_v8  ;;  %480 = vmatprep.mubr.msk.bf16.mxu1 %vm98_vm0, %v500_v9 }
  0x16   :  { %473 = vmatmul.mubr.msk.bf16.gmra.mrb[4].mxu0 %vm98_vm0, %v501_v10  ;;  %481 = vmatmul.mubr.msk.bf16.gmra.mrb[4].mxu1 %vm98_vm0, %v502_v11 }
  0xe1   :  { %v470_v13 = vpop.f32.mrb[0].mxu0  ;;  %v478_v14 = vpop.f32.mrb[0].mxu1 }
  0xe2   :  { %v170_v15 = vadd.f32 %v470_v13, %v567_v12  ;;  %v202_v16 = vadd.f32 %v478_v14, %v567_v12  ;;  %v161_v17 = vpop.f32.mrb[1].mxu0  ;;  %v193_v18 = vpop.f32.mrb[1].mxu1 }
  0xe3   :  { %v162_v20 = vadd.f32 %v567_v12, %v161_v17  ;;  %v194_v21 = vadd.f32 %v567_v12, %v193_v18  ;;  %v471_v22 = vpop.f32.mrb[2].mxu0  ;;  %v479_v23 = vpop.f32.mrb[2].mxu1 }
  0xe4   :  { %vm226_vm3 = vcmp.ge.f32.partialorder %v170_v15, 0.0  ;;  %v242_v24 = vmul.f32 0.2, %v170_v15  ;;  %vm234_vm4 = vcmp.ge.f32.partialorder %v202_v16, 0.0  ;;  %v250_v25 = vmul.f32 0.2, %v202_v16 }
  0xe5   :  { %vm224_vm5 = vcmp.ge.f32.partialorder %v162_v20, 0.0  ;;  %v240_v26 = vmul.f32 0.2, %v162_v20  ;;  %vm232_vm6 = vcmp.ge.f32.partialorder %v194_v21, 0.0  ;;  %v248_v27 = vmul.f32 0.2, %v194_v21 }
  0xe6   :  { %v258_v29 = vsel %vm226_vm3, %v170_v15, %v242_v24  ;;  %v266_v30 = vsel %vm234_vm4, %v202_v16, %v250_v25  ;;  %v173_v31 = vadd.f32 %v471_v22, %v567_v12  ;;  %v205_v32 = vadd.f32 %v479_v23, %v567_v12  ;;  %v164_v33 = vpop.f32.mrb[3].mxu0  ;;  %v196_v34 = vpop.f32.mrb[3].mxu1 }
  0xe7   :  { %v278_v35 = vmul.f32 %v574_v19, %v258_v29  ;;  %v286_v36 = vmul.f32 %v574_v19, %v266_v30  ;;  %v256_v37 = vsel %vm224_vm5, %v162_v20, %v240_v26  ;;  %v264_v38 = vsel %vm232_vm6, %v194_v21, %v248_v27 }
  0xe8   :  { %v276_v39 = vmul.f32 %v574_v19, %v256_v37  ;;  %v284_v40 = vmul.f32 %v574_v19, %v264_v38  ;;  %vm227_vm7 = vcmp.ge.f32.partialorder %v173_v31, 0.0  ;;  %v243_v41 = vmul.f32 0.2, %v173_v31 }
  0xe9   :  { %v298_v42 = vadd.f32 %v581_v28, %v278_v35  ;;  %v306_v43 = vadd.f32 %v581_v28, %v286_v36  ;;  %vm235_vm8 = vcmp.ge.f32.partialorder %v205_v32, 0.0  ;;  %v251_v44 = vmul.f32 0.2, %v205_v32  ;;  %v474_v45 = vpop.f32.mrb[4].mxu0  ;;  %v482_v46 = vpop.f32.mrb[4].mxu1 }
  0xea   :  { %v296_v47 = vadd.f32 %v581_v28, %v276_v39  ;;  %v304_v48 = vadd.f32 %v581_v28, %v284_v40  ;;  %v259_v49 = vsel %vm227_vm7, %v173_v31, %v243_v41  ;;  %v165_v50 = vadd.f32 %v567_v12, %v164_v33  ;;  %v177_v51 = vpop.f32.mrb[5].mxu0  ;;  %v209_v52 = vpop.f32.mrb[5].mxu1 }
  0xeb   :  { %v437_v53 = vpack.c.bf16 %v298_v42, %v298_v42  ;;  %v445_v54 = vpack.c.bf16 %v306_v43, %v306_v43  ;;  %v279_v55 = vmul.f32 %v574_v19, %v259_v49  ;;  %v267_v56 = vsel %vm235_vm8, %v205_v32, %v251_v44  ;;  %v475_v57 = vpop.f32.mrb[6].mxu0  ;;  %v483_v58 = vpop.f32.mrb[6].mxu1 }
  0xec   :  { %v435_v59 = vpack.c.bf16 %v296_v47, %v296_v47  ;;  %v443_v60 = vpack.c.bf16 %v304_v48, %v304_v48  ;;  %v287_v61 = vmul.f32 %v574_v19, %v267_v56  ;;  %vm225_vm9 = vcmp.ge.f32.partialorder %v165_v50, 0.0  ;;  %v180_v62 = vpop.f32.mrb[7].mxu0  ;;  %v212_v63 = vpop.f32.mrb[7].mxu1 }
  0xed   :  { %379 = vst.msk [vmem:[%s695_s3 + $0x8] sm:$0xf] %vm376_vm2, %v437_v53  ;;  %387 = vst.msk [vmem:[%s695_s3 + $0x28] sm:$0xf] %vm376_vm2, %v445_v54  ;;  %v299_v0 = vadd.f32 %v581_v28, %v279_v55  ;;  %v241_v1 = vmul.f32 0.2, %v165_v50  ;;  %v197_v2 = vadd.f32 %v567_v12, %v196_v34  ;;  %v186_v3 = vadd.f32 %v474_v45, %v567_v12 }
  0xee   :  { %377 = vst.msk [vmem:[%s695_s3] sm:$0xf] %vm376_vm2, %v435_v59  ;;  %385 = vst.msk [vmem:[%s695_s3 + $0x20] sm:$0xf] %vm376_vm2, %v443_v60  ;;  %v307_v4 = vadd.f32 %v581_v28, %v287_v61  ;;  %v218_v5 = vadd.f32 %v482_v46, %v567_v12  ;;  %v178_v6 = vadd.f32 %v567_v12, %v177_v51 }
  0xef   :  { %v210_v7 = vadd.f32 %v567_v12, %v209_v52  ;;  %v438_v8 = vpack.c.bf16 %v299_v0, %v299_v0  ;;  %v257_v9 = vsel %vm225_vm9, %v165_v50, %v241_v1  ;;  %vm233_vm10 = vcmp.ge.f32.partialorder %v197_v2, 0.0 }
  0xf0   :  { %v249_v10 = vmul.f32 0.2, %v197_v2  ;;  %v446_v11 = vpack.c.bf16 %v307_v4, %v307_v4  ;;  %v277_v13 = vmul.f32 %v574_v19, %v257_v9  ;;  %vm230_vm11 = vcmp.ge.f32.partialorder %v186_v3, 0.0 }
  0xf1   :  { %v246_v14 = vmul.f32 0.2, %v186_v3  ;;  %380 = vst.msk [vmem:[%s695_s3 + $0xc] sm:$0xf] %vm376_vm2, %v438_v8  ;;  %vm238_vm12 = vcmp.ge.f32.partialorder %v218_v5, 0.0  ;;  %vm228_vm13 = vcmp.ge.f32.partialorder %v178_v6, 0.0  ;;  %v189_v33 = vadd.f32 %v475_v57, %v567_v12 }
  0xf2   :  { %v265_v15 = vsel %vm233_vm10, %v197_v2, %v249_v10  ;;  %v254_v16 = vmul.f32 0.2, %v218_v5  ;;  %388 = vst.msk [vmem:[%s695_s3 + $0x2c] sm:$0xf] %vm376_vm2, %v446_v11  ;;  %v297_v17 = vadd.f32 %v581_v28, %v277_v13  ;;  %v244_v21 = vmul.f32 0.2, %v178_v6 }
  0xf3   :  { %v285_v18 = vmul.f32 %v574_v19, %v265_v15  ;;  %v262_v20 = vsel %vm230_vm11, %v186_v3, %v246_v14  ;;  %vm236_vm14 = vcmp.ge.f32.partialorder %v210_v7, 0.0  ;;  %v252_v24 = vmul.f32 0.2, %v210_v7 }
  0xf4   :  { %v282_v22 = vmul.f32 %v574_v19, %v262_v20  ;;  %v270_v23 = vsel %vm238_vm12, %v218_v5, %v254_v16  ;;  %v436_v25 = vpack.c.bf16 %v297_v17, %v297_v17  ;;  %v260_v29 = vsel %vm228_vm13, %v178_v6, %v244_v21 }
  0xf5   :  { %v305_v26 = vadd.f32 %v581_v28, %v285_v18  ;;  %v290_v27 = vmul.f32 %v574_v19, %v270_v23  ;;  %v280_v31 = vmul.f32 %v574_v19, %v260_v29  ;;  %v268_v32 = vsel %vm236_vm14, %v210_v7, %v252_v24 }
  0xf6   :  { %v302_v30 = vadd.f32 %v581_v28, %v282_v22  ;;  %378 = vst.msk [vmem:[%s695_s3 + $0x4] sm:$0xf] %vm376_vm2, %v436_v25  ;;  %v288_v36 = vmul.f32 %v574_v19, %v268_v32  ;;  %v221_v37 = vadd.f32 %v483_v58, %v567_v12  ;;  %vm231_vm15 = vcmp.ge.f32.partialorder %v189_v33, 0.0 }
  0xf7   :  { %v444_v34 = vpack.c.bf16 %v305_v26, %v305_v26  ;;  %v310_v35 = vadd.f32 %v581_v28, %v290_v27  ;;  %v300_v39 = vadd.f32 %v581_v28, %v280_v31  ;;  %v247_v40 = vmul.f32 0.2, %v189_v33 }
  0xf8   :  { %v441_v38 = vpack.c.bf16 %v302_v30, %v302_v30  ;;  %v308_v42 = vadd.f32 %v581_v28, %v288_v36  ;;  %vm239_vm0 = vcmp.ge.f32.partialorder %v221_v37, 0.0  ;;  %v255_v43 = vmul.f32 0.2, %v221_v37 }
  0xf9   :  { %386 = vst.msk [vmem:[%s695_s3 + $0x24] sm:$0xf] %vm376_vm2, %v444_v34  ;;  %v449_v41 = vpack.c.bf16 %v310_v35, %v310_v35  ;;  %v439_v44 = vpack.c.bf16 %v300_v39, %v300_v39  ;;  %v263_v45 = vsel %vm231_vm15, %v189_v33, %v247_v40  ;;  %v181_v46 = vadd.f32 %v567_v12, %v180_v62 }
  0xfa   :  { %383 = vst.msk [vmem:[%s695_s3 + $0x18] sm:$0xf] %vm376_vm2, %v441_v38  ;;  %v213_v47 = vadd.f32 %v567_v12, %v212_v63  ;;  %v447_v48 = vpack.c.bf16 %v308_v42, %v308_v42  ;;  %v283_v49 = vmul.f32 %v574_v19, %v263_v45  ;;  %v271_v50 = vsel %vm239_vm0, %v221_v37, %v255_v43 }
  0xfb   :  { %391 = vst.msk [vmem:[%s695_s3 + $0x38] sm:$0xf] %vm376_vm2, %v449_v41  ;;  %381 = vst.msk [vmem:[%s695_s3 + $0x10] sm:$0xf] %vm376_vm2, %v439_v44  ;;  %v291_v51 = vmul.f32 %v574_v19, %v271_v50  ;;  %vm229_vm1 = vcmp.ge.f32.partialorder %v181_v46, 0.0 }
  0xfc   :  { %v245_v52 = vmul.f32 0.2, %v181_v46  ;;  %vm237_vm3 = vcmp.ge.f32.partialorder %v213_v47, 0.0  ;;  %389 = vst.msk [vmem:[%s695_s3 + $0x30] sm:$0xf] %vm376_vm2, %v447_v48  ;;  %v303_v12 = vadd.f32 %v581_v28, %v283_v49 }
  0xfd   :  { %v253_v53 = vmul.f32 0.2, %v213_v47  ;;  %v311_v54 = vadd.f32 %v581_v28, %v291_v51 }
  0xfe   :  { %v261_v55 = vsel %vm229_vm1, %v181_v46, %v245_v52  ;;  %v442_v56 = vpack.c.bf16 %v303_v12, %v303_v12 }
  0xff   :  { %v281_v57 = vmul.f32 %v574_v19, %v261_v55  ;;  %v269_v58 = vsel %vm237_vm3, %v213_v47, %v253_v53  ;;  %v450_v59 = vpack.c.bf16 %v311_v54, %v311_v54 }
 0x100   :  { %v289_v60 = vmul.f32 %v574_v19, %v269_v58  ;;  %384 = vst.msk [vmem:[%s695_s3 + $0x1c] sm:$0xf] %vm376_vm2, %v442_v56 }
 0x101   :  { %v301_v61 = vadd.f32 %v581_v28, %v281_v57  ;;  %392 = vst.msk [vmem:[%s695_s3 + $0x3c] sm:$0xf] %vm376_vm2, %v450_v59 }
 0x102   :  { %v309_v62 = vadd.f32 %v581_v28, %v289_v60 }
 0x103   :  { %v440_v63 = vpack.c.bf16 %v301_v61, %v301_v61 }
 0x104   :  { %v448_v0 = vpack.c.bf16 %v309_v62, %v309_v62 }
 0x105   :  { %382 = vst.msk [vmem:[%s695_s3 + $0x14] sm:$0xf] %vm376_vm2, %v440_v63 }
 0x106   :  { %390 = vst.msk [vmem:[%s695_s3 + $0x34] sm:$0xf] %vm376_vm2, %v448_v0 }

// kernel: discriminator_forward.5
= control target key start
LH: loop header
LB: loop body
LE: loop exit
PB: predicated region body
PF: predicated region fallthrough
CT: control target
= control target key end

     0   :  { %v285_v0 = vmov 0   ;;  %vm116_vm0 = vcmask 130048   ;;  %vm216_vm5 = vcmask 257024   ;;  %s366_s1 = inlined_call_operand.vmem [shape: bf16[144,32], index: 1, kind: input, shape index: {}]   ;;  %s367_s0 = inlined_call_operand.vmem [shape: bf16[32,144], index: 0, kind: input, shape index: {}]   ;;  %s368_s2 = inlined_call_operand.vmem [shape: f32[3,32], index: 2, kind: input, shape index: {}]   ;;  %s369_s3 = inlined_call_operand.vmem [shape: bf16[32,32], index: 3, kind: output, shape index: {}]  }
   0x1   :  { %123 = vmatprep.subr.bf16.mxu0 %v285_v0  ;;  %251 = vmatprep.subr.bf16.mxu1 %v285_v0  ;;  %v270_v1 = vld [vmem:[%s366_s1] sm:$0xff]   ;;  %v271_v2 = vld [vmem:[%s366_s1 + $0x8] sm:$0xff]   ;;  %v272_v3 = vld [vmem:[%s366_s1 + $0x10] sm:$0xff]  }
   0x2   :  { %124 = vmatpush1.bf16.msra.mxu0 %v270_v1  ;;  %260 = vmatpush1.bf16.msra.mxu1 %v270_v1  ;;  %v273_v4 = vld [vmem:[%s366_s1 + $0x18] sm:$0xff]   ;;  %v281_v5 = vld [vmem:[%s367_s0 + $0x4] ss:$8 sps:$4 sm:$0xff]   ;;  %v276_v9 = vld [vmem:[%s366_s1 + $0x30] sm:$0xff]  }
   0x3   :  { %125 = vmatprep.subr.bf16.mxu0 %v285_v0  ;;  %252 = vmatprep.subr.bf16.mxu1 %v285_v0  ;;  %v284_v6 = vld [vmem:[%s367_s0 + $0x14] ss:$8 sps:$4 sm:$0xff]   ;;  %v274_v7 = vld [vmem:[%s366_s1 + $0x20] sm:$0xff]   ;;  %v275_v8 = vld [vmem:[%s366_s1 + $0x28] sm:$0xff]  }
   0x4   :  { %239 = vmatprep.mubr.msk.bf16.mxu0 %vm116_vm0, %v281_v5  ;;  %240 = vmatprep.mubr.msk.bf16.mxu1 %vm116_vm0, %v284_v6  ;;  %v277_v10 = vld [vmem:[%s366_s1 + $0x38] sm:$0xff]   ;;  %v278_v11 = vld [vmem:[%s366_s1 + $0x40] sm:$0xff]  }
   0x5   :  { %v279_v12 = vld [vmem:[%s367_s0] ss:$8 sps:$4 sm:$0xff]   ;;  %v282_v13 = vld [vmem:[%s367_s0 + $0x10] ss:$8 sps:$4 sm:$0xff]  }
   0x6   :  { %126 = vmatpush1.bf16.msra.mxu0 %v271_v2  ;;  %261 = vmatpush1.bf16.msra.mxu1 %v271_v2  ;;  %v225_v14 = vld [vmem:[%s368_s2] ss:$0 sm:$0xff]  ;;  %v241_v21 = vld [vmem:[%s368_s2 + $0x1] ss:$0 sm:$0xff]  ;;  %v242_v30 = vld [vmem:[%s368_s2 + $0x2] ss:$0 sm:$0xff] }
   0x7   :  { %127 = vmatprep.subr.bf16.mxu0 %v285_v0  ;;  %253 = vmatprep.subr.bf16.mxu1 %v285_v0 }
   0xa   :  { %128 = vmatpush1.bf16.msra.mxu0 %v272_v3  ;;  %262 = vmatpush1.bf16.msra.mxu1 %v272_v3 }
   0xb   :  { %129 = vmatprep.subr.bf16.mxu0 %v285_v0  ;;  %254 = vmatprep.subr.bf16.mxu1 %v285_v0 }
   0xe   :  { %130 = vmatpush1.bf16.msra.mxu0 %v273_v4  ;;  %263 = vmatpush1.bf16.msra.mxu1 %v273_v4 }
   0xf   :  { %131 = vmatprep.subr.bf16.mxu0 %v285_v0  ;;  %255 = vmatprep.subr.bf16.mxu1 %v285_v0 }
  0x12   :  { %132 = vmatpush1.bf16.msra.mxu0 %v274_v7  ;;  %264 = vmatpush1.bf16.msra.mxu1 %v274_v7 }
  0x13   :  { %133 = vmatprep.subr.bf16.mxu0 %v285_v0  ;;  %256 = vmatprep.subr.bf16.mxu1 %v285_v0 }
  0x16   :  { %134 = vmatpush1.bf16.msra.mxu0 %v275_v8  ;;  %265 = vmatpush1.bf16.msra.mxu1 %v275_v8 }
  0x17   :  { %135 = vmatprep.subr.bf16.mxu0 %v285_v0  ;;  %257 = vmatprep.subr.bf16.mxu1 %v285_v0 }
  0x1a   :  { %136 = vmatpush1.bf16.msra.mxu0 %v276_v9  ;;  %266 = vmatpush1.bf16.msra.mxu1 %v276_v9 }
  0x1b   :  { %137 = vmatprep.subr.bf16.mxu0 %v285_v0  ;;  %258 = vmatprep.subr.bf16.mxu1 %v285_v0 }
  0x1e   :  { %138 = vmatpush1.bf16.msra.mxu0 %v277_v10  ;;  %267 = vmatpush1.bf16.msra.mxu1 %v277_v10 }
  0x1f   :  { %139 = vmatprep.subr.bf16.mxu0 %v285_v0  ;;  %259 = vmatprep.subr.bf16.mxu1 %v285_v0 }
  0x22   :  { %140 = vmatpush1.bf16.msra.mxu0 %v278_v11  ;;  %268 = vmatpush1.bf16.msra.mxu1 %v278_v11 }
  0x25   :  { %156 = vmatmul.mubr.bf16.vlgmr.msra.gmra.mrb[0].mxu0 %v279_v12  ;;  %164 = vmatmul.mubr.bf16.vlgmr.msra.gmra.mrb[0].mxu1 %v282_v13 }
  0xf8   :  { %v157_v15 = vpop.f32.mrb[0].mxu0  ;;  %v165_v16 = vpop.f32.mrb[0].mxu1 }
  0xf9   :  { %v158_v17 = vadd.f32 %v225_v14, %v157_v15  ;;  %v166_v18 = vadd.f32 %v225_v14, %v165_v16  ;;  %v159_v19 = vpop.f32.mrb[1].mxu0  ;;  %v167_v20 = vpop.f32.mrb[1].mxu1 }
  0xfa   :  { %v160_v22 = vpop.f32.mrb[2].mxu0  ;;  %v168_v23 = vpop.f32.mrb[2].mxu1 }
  0xfb   :  { %vm172_vm1 = vcmp.ge.f32.partialorder %v158_v17, 0.0  ;;  %v176_v24 = vmul.f32 0.2, %v158_v17  ;;  %vm174_vm2 = vcmp.ge.f32.partialorder %v166_v18, 0.0  ;;  %v178_v25 = vmul.f32 0.2, %v166_v18 }
  0xfc   :  { %v161_v26 = vadd.f32 %v225_v14, %v160_v22  ;;  %v169_v27 = vadd.f32 %v225_v14, %v168_v23  ;;  %v162_v28 = vpop.f32.mrb[3].mxu0  ;;  %v170_v29 = vpop.f32.mrb[3].mxu1 }
  0xfd   :  { %v180_v31 = vsel %vm172_vm1, %v158_v17, %v176_v24  ;;  %v182_v32 = vsel %vm174_vm2, %v166_v18, %v178_v25 }
  0xfe   :  { %v188_v33 = vmul.f32 %v241_v21, %v180_v31  ;;  %v190_v34 = vmul.f32 %v241_v21, %v182_v32  ;;  %vm173_vm3 = vcmp.ge.f32.partialorder %v161_v26, 0.0  ;;  %v177_v35 = vmul.f32 0.2, %v161_v26 }
  0xff   :  { %vm175_vm4 = vcmp.ge.f32.partialorder %v169_v27, 0.0  ;;  %v179_v36 = vmul.f32 0.2, %v169_v27 }
 0x100   :  { %v196_v37 = vadd.f32 %v242_v30, %v188_v33  ;;  %v198_v38 = vadd.f32 %v242_v30, %v190_v34  ;;  %v181_v39 = vsel %vm173_vm3, %v161_v26, %v177_v35 }
 0x101   :  { %v189_v40 = vmul.f32 %v241_v21, %v181_v39  ;;  %v183_v41 = vsel %vm175_vm4, %v169_v27, %v179_v36 }
 0x102   :  { %v247_v42 = vpack.c.bf16 %v196_v37, %v196_v37  ;;  %v249_v43 = vpack.c.bf16 %v198_v38, %v198_v38  ;;  %v191_v44 = vmul.f32 %v241_v21, %v183_v41 }
 0x103   :  { %v197_v45 = vadd.f32 %v242_v30, %v189_v40 }
 0x104   :  { %217 = vst.msk [vmem:[%s369_s3] sm:$0xf] %vm216_vm5, %v247_v42  ;;  %219 = vst.msk [vmem:[%s369_s3 + $0x8] sm:$0xf] %vm216_vm5, %v249_v43  ;;  %v199_v46 = vadd.f32 %v242_v30, %v191_v44 }
 0x105   :  { %v248_v47 = vpack.c.bf16 %v197_v45, %v197_v45 }
 0x106   :  { %v250_v48 = vpack.c.bf16 %v199_v46, %v199_v46 }
 0x107   :  { %218 = vst.msk [vmem:[%s369_s3 + $0x4] sm:$0xf] %vm216_vm5, %v248_v47 }
 0x108   :  { %220 = vst.msk [vmem:[%s369_s3 + $0xc] sm:$0xf] %vm216_vm5, %v250_v48 }

// kernel: discriminator_forward.6
= control target key start
LH: loop header
LB: loop body
LE: loop exit
PB: predicated region body
PF: predicated region fallthrough
CT: control target
= control target key end

     0   :  { %v363_v1 = vmov 0.0   ;;  %vm364_vm0 = vmmov 0   ;;  %vm178_vm1 = vcmask 261120   ;;  %vm276_vm3 = vcmask 519168   ;;  %s457_s1 = inlined_call_operand.vmem [shape: bf16[288,64], index: 1, kind: input, shape index: {}]   ;;  %s458_s0 = inlined_call_operand.vmem [shape: bf16[8,288], index: 0, kind: input, shape index: {}]   ;;  %s459_s2 = inlined_call_operand.vmem [shape: f32[3,64], index: 2, kind: input, shape index: {}]   ;;  %s460_s3 = inlined_call_operand.vmem [shape: bf16[8,64], index: 3, kind: output, shape index: {}]  }
   0x1   :  { %v342_v0 = vld [vmem:[%s457_s1 + $0x40] sm:$0xff]   ;;  %332 = vmatprep.subr.bf16.mxu1 %v363_v1  ;;  %336 = vmatprep.mubr.msk.bf16.mxu1 %vm364_vm0, %v363_v1  ;;  %v344_v3 = vld [vmem:[%s457_s1 + $0x48] sm:$0xff]   ;;  %v346_v5 = vld [vmem:[%s457_s1 + $0x50] sm:$0xff]  }
   0x2   :  { %v343_v2 = vld [vmem:[%s457_s1] sm:$0xff]   ;;  %307 = vmatprep.subr.bf16.mxu0 %v342_v0  ;;  %v345_v4 = vld [vmem:[%s457_s1 + $0x8] sm:$0xff]   ;;  %v347_v6 = vld [vmem:[%s457_s1 + $0x10] sm:$0xff]  }
   0x3   :  { %308 = vmatpush3.bf16.msra.mxu0 %v343_v2  ;;  %v348_v7 = vld [vmem:[%s457_s1 + $0x58] sm:$0xff]   ;;  %v350_v9 = vld [vmem:[%s457_s1 + $0x60] sm:$0xff]   ;;  %v352_v12 = vld [vmem:[%s457_s1 + $0x68] sm:$0xff]  }
   0x4   :  { %309 = vmatprep.subr.bf16.mxu0 %v344_v3  ;;  %v349_v8 = vld [vmem:[%s457_s1 + $0x18] sm:$0xff]   ;;  %v356_v10 = vld [vmem:[%s457_s1 + $0x80] sm:$0xff]   ;;  %v362_v15 = vld [vmem:[%s457_s1 + $0x88] sm:$0xff]  }
   0x5   :  { %v351_v11 = vld [vmem:[%s457_s1 + $0x20] sm:$0xff]   ;;  %333 = vmatpush3.bf16.msra.mxu1 %v356_v10  ;;  %v353_v16 = vld [vmem:[%s457_s1 + $0x28] sm:$0xff]   ;;  %v354_v17 = vld [vmem:[%s457_s1 + $0x70] sm:$0xff]  }
   0x6   :  { %334 = vmatprep.subr.bf16.mxu1 %v363_v1  ;;  %v15_v13 = vld [vmem:[%s458_s0] sm:$0xff]  ;;  %v361_v18 = vld [vmem:[%s458_s0 + $0x8] ss:$0 sps:$4 sm:$0xff]   ;;  %v355_v19 = vld [vmem:[%s457_s1 + $0x30] sm:$0xff]  }
   0x7   :  { %310 = vmatpush3.bf16.msra.mxu0 %v345_v4  ;;  %v284_v14 = vcombine.high %v15_v13, %v15_v13  ;;  %v357_v20 = vld [vmem:[%s457_s1 + $0x78] sm:$0xff]   ;;  %v283_v22 = vcombine.low %v15_v13, %v15_v13  ;;  %v282_v29 = vld [vmem:[%s459_s2] ss:$0 sm:$0xff]  ;;  %v305_v35 = vld [vmem:[%s459_s2 + $0x1] ss:$0 sm:$0xff] }
   0x8   :  { %311 = vmatprep.subr.bf16.mxu0 %v346_v5  ;;  %v358_v21 = vld [vmem:[%s457_s1 + $0x38] sm:$0xff]   ;;  %v306_v37 = vld [vmem:[%s459_s2 + $0x2] ss:$0 sm:$0xff] }
   0x9   :  { %214 = vmatprep.mubr.bf16.mxu0 %v284_v14  ;;  %335 = vmatpush3.bf16.msra.mxu1 %v362_v15 }
   0xb   :  { %312 = vmatpush3.bf16.msra.mxu0 %v347_v6 }
   0xc   :  { %313 = vmatprep.subr.bf16.mxu0 %v348_v7  ;;  %337 = vmatmul.mubr.msk.bf16.vlgmr.msra.gmra.mrb[0].mxu1 %vm178_vm1, %v361_v18 }
   0xf   :  { %314 = vmatpush3.bf16.msra.mxu0 %v349_v8 }
  0x10   :  { %315 = vmatprep.subr.bf16.mxu0 %v350_v9 }
  0x13   :  { %316 = vmatpush3.bf16.msra.mxu0 %v351_v11 }
  0x14   :  { %317 = vmatprep.subr.bf16.mxu0 %v352_v12 }
  0x17   :  { %318 = vmatpush3.bf16.msra.mxu0 %v353_v16 }
  0x18   :  { %319 = vmatprep.subr.bf16.mxu0 %v354_v17 }
  0x1b   :  { %320 = vmatpush3.bf16.msra.mxu0 %v355_v19 }
  0x1c   :  { %321 = vmatprep.subr.bf16.mxu0 %v357_v20 }
  0x1f   :  { %322 = vmatpush3.bf16.msra.mxu0 %v358_v21 }
  0x22   :  { %215 = vmatmul.mubr.bf16.vlgmr.msra.gmra.mrb[0].mxu0 %v283_v22 }
  0xdf   :  { %v256_v23 = vpop.f32.mrb[0].mxu1 }
  0xe0   :  { %v338_v24 = vpop.f32.mrb[1].mxu1 }
  0xe1   :  { %v259_v25 = vpop.f32.mrb[2].mxu1 }
  0xe2   :  { %v339_v26 = vpop.f32.mrb[3].mxu1 }
  0xf5   :  { %v323_v27 = vpop.f32.mrb[0].mxu0 }
  0xf6   :  { %v324_v28 = vpop.f32.mrb[1].mxu0 }
  0xf7   :  { %v325_v30 = vadd.f32 %v324_v28, %v323_v27  ;;  %v326_v31 = vpop.f32.mrb[2].mxu0 }
  0xf8   :  { %v327_v32 = vpop.f32.mrb[3].mxu0 }
  0xf9   :  { %v217_v33 = vadd.f32 %v325_v30, %v282_v29 }
  0xfb   :  { %v257_v34 = vadd.f32 %v256_v23, %v217_v33 }
  0xfd   :  { %vm262_vm2 = vcmp.ge.f32.partialorder %v257_v34, 0.0  ;;  %v263_v36 = vmul.f32 0.2, %v257_v34 }
  0xff   :  { %v264_v38 = vsel %vm262_vm2, %v257_v34, %v263_v36 }
 0x100   :  { %v269_v39 = vmul.f32 %v305_v35, %v264_v38 }
 0x102   :  { %v274_v40 = vadd.f32 %v306_v37, %v269_v39 }
 0x104   :  { %v275_v41 = vpack.c.bf16 %v274_v40, %v274_v40 }
 0x106   :  { %277 = vst.msk [vmem:[%s460_s3] sm:$0xf] %vm276_vm3, %v275_v41 }

// kernel: discriminator_forward.7
= control target key start
LH: loop header
LB: loop body
LE: loop exit
PB: predicated region body
PF: predicated region fallthrough
CT: control target
= control target key end

     0   :  { %s961_s20 = smov 0   ;;  %s1106_s0 = inlined_call_operand.vmem [shape: bf16[2,1,576], index: 0, kind: input, shape index: {}]   ;;  %s1107_s1 = inlined_call_operand.vmem [shape: bf16[576,128], index: 1, kind: input, shape index: {}]   ;;  %s1108_s2 = inlined_call_operand.vmem [shape: f32[3,128], index: 2, kind: input, shape index: {}]   ;;  %s1109_s3 = inlined_call_operand.vmem [shape: f32[1,128], index: 3, kind: input, shape index: {}]   ;;  %s1110_s4 = inlined_call_operand.<no memory space> [shape: f32[1,1], index: 4, kind: input, shape index: {}]   ;;  %s1111_s5 = inlined_call_operand.vmem [shape: f32[2,1,1], index: 5, kind: output, shape index: {}]  }
   0x1   :  { %v10_v0 = vstv %s1110_s4 }
   0x2   :  { %11 = vst [vmem:[#allocation2] sm:$0x1] %v10_v0 }
   0x3 LB: > { %s757_s21 = sadd.s32 4294967295, %s923_s20   ;;  %p761_p0 = scmp.ge.s32.totalorder %s923_s20, 1  ;;  %s923_s20 = sphi %s961_s20, %s17_s20  }
   0x4   : > { %p188_p1 = scmp.lt.s32.totalorder %s923_s20, 3 }
   0x6   : > { %p189_p2 = pnand %p761_p0, %p188_p1 }
   0x7   : > { %v876_v1 = vld [vmem:[%s1107_s1 + $0x40] sm:$0xff] (!%p189_p2)   ;;  %v880_v5 = vld [vmem:[%s1107_s1 + $0x48] sm:$0xff] (!%p189_p2)   ;;  %v884_v9 = vld [vmem:[%s1107_s1 + $0x50] sm:$0xff] (!%p189_p2)   ;;  %p213_p3 = scmp.lt.s32.totalorder (!%p189_p2), %s757_s21, 1  ;;  %v302_v30 = vlaneseq (!%p189_p2)  ;;  %v925_v33 = vmov (!%p189_p2), 1966171168  }
   0x8   : > { %192 = sbr.rel (%p189_p2) target bundleno = 516 (0x204), region = 40  ;;  %v877_v2 = vld [vmem:[%s1107_s1] sm:$0xff] (!%p189_p2)   ;;  %801 = vmatprep.subr.bf16.mxu0 (!%p189_p2), %v876_v1  ;;  %v881_v6 = vld [vmem:[%s1107_s1 + $0x8] sm:$0xff] (!%p189_p2)   ;;  %v885_v10 = vld [vmem:[%s1107_s1 + $0x10] sm:$0xff] (!%p189_p2)   ;;  %v300_v34 = vunpack.c.l.s4 (!%p189_p2), %v925_v33  ;;  %v926_v37 = vmov (!%p189_p2), 0.0   ;;  %vm927_vm0 = vmmov (!%p189_p2), 0  }
   0x9   : > { %v878_v3 = vld [vmem:[%s1107_s1 + $0xc0] sm:$0xff] (!%p189_p2)   ;;  %802 = vmatpush3.bf16.msra.mxu0 (!%p189_p2), %v877_v2  ;;  %v882_v7 = vld [vmem:[%s1107_s1 + $0xc8] sm:$0xff] (!%p189_p2)   ;;  %v886_v11 = vld [vmem:[%s1107_s1 + $0xd0] sm:$0xff] (!%p189_p2)   ;;  %v303_v35 = vshrl.u32 (!%p189_p2), %v302_v30, 7  ;;  %vm557_vm1 = vcmask (!%p189_p2), 523264   ;;  %vm688_vm3 = vcmask (!%p189_p2), 1040384  }
   0xa   : > { %v879_v4 = vld [vmem:[%s1107_s1 + $0x80] sm:$0xff] (!%p189_p2)   ;;  %823 = vmatprep.subr.bf16.mxu1 (!%p189_p2), %v878_v3  ;;  %803 = vmatprep.subr.bf16.mxu0 (!%p189_p2), %v880_v5  ;;  %v883_v8 = vld [vmem:[%s1107_s1 + $0x88] sm:$0xff] (!%p189_p2)   ;;  %v887_v12 = vld [vmem:[%s1107_s1 + $0x90] sm:$0xff] (!%p189_p2)   ;;  %v301_v38 = vunpack.c.0.s8 (!%p189_p2), %v300_v34  ;;  %vm708_vm4 = vcmask (!%p189_p2), 0  }
   0xb   : > { %824 = vmatpush3.bf16.msra.mxu1 (!%p189_p2), %v879_v4  ;;  %v888_v13 = vld [vmem:[%s1107_s1 + $0x58] sm:$0xff] (!%p189_p2)   ;;  %v892_v17 = vld [vmem:[%s1107_s1 + $0x60] sm:$0xff] (!%p189_p2)   ;;  %v896_v21 = vld [vmem:[%s1107_s1 + $0x68] sm:$0xff] (!%p189_p2)  }
   0xc   : > { %825 = vmatprep.subr.bf16.mxu1 (!%p189_p2), %v882_v7  ;;  %v889_v14 = vld [vmem:[%s1107_s1 + $0x18] sm:$0xff] (!%p189_p2)   ;;  %v893_v18 = vld [vmem:[%s1107_s1 + $0x20] sm:$0xff] (!%p189_p2)   ;;  %v897_v22 = vld [vmem:[%s1107_s1 + $0x28] sm:$0xff] (!%p189_p2)   ;;  %v304_v40 = vsub.s32 (!%p189_p2), %v301_v38, %v303_v35 }
   0xd   : > { %804 = vmatpush3.bf16.msra.mxu0 (!%p189_p2), %v881_v6  ;;  %v890_v15 = vld [vmem:[%s1107_s1 + $0xd8] sm:$0xff] (!%p189_p2)   ;;  %v894_v19 = vld [vmem:[%s1107_s1 + $0xe0] sm:$0xff] (!%p189_p2)   ;;  %v898_v23 = vld [vmem:[%s1107_s1 + $0xe8] sm:$0xff] (!%p189_p2)  }
   0xe   : > { %805 = vmatprep.subr.bf16.mxu0 (!%p189_p2), %v884_v9  ;;  %v891_v16 = vld [vmem:[%s1107_s1 + $0x98] sm:$0xff] (!%p189_p2)   ;;  %v895_v20 = vld [vmem:[%s1107_s1 + $0xa0] sm:$0xff] (!%p189_p2)   ;;  %v899_v24 = vld [vmem:[%s1107_s1 + $0xa8] sm:$0xff] (!%p189_p2)  }
   0xf   : > { %826 = vmatpush3.bf16.msra.mxu1 %v883_v8  ;;  %v900_v25 = vld [vmem:[%s1107_s1 + $0x70] sm:$0xff]   ;;  %s1113_s21 = smov (!%p213_p3, %s757_s21), 1  ;;  %v904_v29 = vld [vmem:[%s1107_s1 + $0x78] sm:$0xff]   ;;  %v909_v45 = vld [vmem:[%s1107_s1 + $0x100] sm:$0xff]  }
  0x10   : > { %827 = vmatprep.subr.bf16.mxu1 %v886_v11  ;;  %v901_v26 = vld [vmem:[%s1107_s1 + $0x30] sm:$0xff]   ;;  %s862_s6 = smul.u32 5, %s1113_s21  ;;  %v905_v31 = vld [vmem:[%s1107_s1 + $0x38] sm:$0xff]   ;;  %v910_v48 = vld [vmem:[%s1107_s1 + $0x108] sm:$0xff]   ;;  %s219_s11 = scalar_lea.vmem %s1111_s5, %s1113_s21 }
  0x11   : > { %806 = vmatpush3.bf16.msra.mxu0 %v885_v10  ;;  %v902_v27 = vld [vmem:[%s1107_s1 + $0xf0] sm:$0xff]   ;;  %v906_v32 = vld [vmem:[%s1107_s1 + $0xf8] sm:$0xff]   ;;  %v294_v55 = vld [vmem:[%s1108_s2] sm:$0x1] }
  0x12   : > { %807 = vmatprep.subr.bf16.mxu0 %v888_v13  ;;  %v903_v28 = vld [vmem:[%s1107_s1 + $0xb0] sm:$0xff]   ;;  %s216_s13 = scalar_lea.vmem %s1106_s0, %s862_s6  ;;  %v908_v36 = vld [vmem:[%s1107_s1 + $0xb8] sm:$0xff]   ;;  %v295_v9 = vld [vmem:[%s1108_s2 + $0x1] sm:$0x1] }
  0x13   : > { %828 = vmatpush3.bf16.msra.mxu1 %v887_v12  ;;  %v221_v39 = vld [vmem:[%s216_s13] sm:$0x1f]  ;;  %v911_v50 = vld [vmem:[%s1107_s1 + $0x110] sm:$0xff]   ;;  %v912_v52 = vld [vmem:[%s1107_s1 + $0x118] sm:$0xff]  }
  0x14   : > { %829 = vmatprep.subr.bf16.mxu1 %v890_v15  ;;  %v305_v41 = vrot.slane %v221_v39, %v304_v40  ;;  %v298_v49 = vcombine.high %v221_v39, %v221_v39  ;;  %v296_v11 = vld [vmem:[%s1108_s2 + $0x2] sm:$0x1]  ;;  %v686_v13 = vld [vmem:[%s1109_s3] sm:$0x1] }
  0x15   : > { %808 = vmatpush3.bf16.msra.mxu0 %v889_v14 }
  0x16   : > { %809 = vmatprep.subr.bf16.mxu0 %v892_v17  ;;  %v313_v42 = vcombine.high %v305_v41, %v305_v41  ;;  %v320_v43 = vrot.slane %v305_v41, %v304_v40  ;;  %v312_v51 = vrot.slane %v298_v49, %v304_v40 }
  0x17   : > { %830 = vmatpush3.bf16.msra.mxu1 %v891_v16 }
  0x18   : > { %831 = vmatprep.subr.bf16.mxu1 %v894_v19  ;;  %v334_v44 = vrot.slane %v313_v42, %v304_v40  ;;  %v335_v46 = vcombine.high %v320_v43, %v320_v43  ;;  %v327_v53 = vrot.slane %v312_v51, %v304_v40 }
  0x19   : > { %810 = vmatpush3.bf16.msra.mxu0 %v893_v18 }
  0x1a   : > { %811 = vmatprep.subr.bf16.mxu0 %v896_v21  ;;  %593 = vmatprep.mubr.bf16.mxu0 %v334_v44  ;;  %v336_v47 = vcombine.high %v334_v44, %v334_v44 }
  0x1b   : > { %832 = vmatpush3.bf16.msra.mxu1 %v895_v20 }
  0x1c   : > { %833 = vmatprep.subr.bf16.mxu1 %v898_v23  ;;  %633 = vmatprep.mubr.bf16.mxu1 %v336_v47 }
  0x1d   : > { %812 = vmatpush3.bf16.msra.mxu0 %v897_v22 }
  0x1e   : > { %813 = vmatprep.subr.bf16.mxu0 %v900_v25 }
  0x1f   : > { %834 = vmatpush3.bf16.msra.mxu1 %v899_v24  ;;  %v699_v24 = vld [vmem:[#allocation2] sm:$0x1] }
  0x20   : > { %835 = vmatprep.subr.bf16.mxu1 %v902_v27 }
  0x21   : > { %814 = vmatpush3.bf16.msra.mxu0 %v901_v26 }
  0x22   : > { %815 = vmatprep.subr.bf16.mxu0 %v904_v29 }
  0x23   : > { %836 = vmatpush3.bf16.msra.mxu1 %v903_v28 }
  0x24   : > { %837 = vmatprep.subr.bf16.mxu1 %v906_v32 }
  0x25   : > { %816 = vmatpush3.bf16.msra.mxu0 %v905_v31 }
  0x26   : > { %850 = vmatprep.subr.bf16.mxu0 %v926_v37 }
  0x27   : > { %838 = vmatpush3.bf16.msra.mxu1 %v908_v36 }
  0x28   : > { %594 = vmatmul.mubr.bf16.vlgmr.msra.gmra.mrb[0].mxu0 %v320_v43 }
  0x29   : > { %851 = vmatpush3.bf16.msra.mxu0 %v909_v45  ;;  %858 = vmatprep.mubr.msk.bf16.mxu0 %vm927_vm0, %v926_v37 }
  0x2a   : > { %634 = vmatmul.mubr.bf16.vlgmr.msra.gmra.mrb[0].mxu1 %v335_v46  ;;  %852 = vmatprep.subr.bf16.mxu0 %v926_v37 }
  0x2d   : > { %853 = vmatpush3.bf16.msra.mxu0 %v910_v48 }
  0x2e   : > { %854 = vmatprep.subr.bf16.mxu0 %v926_v37 }
  0x31   : > { %855 = vmatpush3.bf16.msra.mxu0 %v911_v50 }
  0x32   : > { %856 = vmatprep.subr.bf16.mxu0 %v926_v37 }
  0x35   : > { %857 = vmatpush3.bf16.msra.mxu0 %v912_v52 }
  0x38   : > { %859 = vmatmul.mubr.msk.bf16.vlgmr.msra.gmra.mrb[4].mxu0 %vm557_vm1, %v327_v53 }
  0xfb   : > { %v817_v54 = vpop.f32.mrb[0].mxu0 }
  0xfc   : > { %v818_v56 = vpop.f32.mrb[1].mxu0 }
  0xfd   : > { %v819_v57 = vadd.f32 %v818_v56, %v817_v54  ;;  %v820_v58 = vpop.f32.mrb[2].mxu0  ;;  %v839_v59 = vpop.f32.mrb[0].mxu1 }
  0xfe   : > { %v821_v60 = vpop.f32.mrb[3].mxu0  ;;  %v840_v61 = vpop.f32.mrb[1].mxu1 }
  0xff   : > { %v596_v62 = vadd.f32 %v819_v57, %v294_v55  ;;  %v841_v63 = vadd.f32 %v840_v61, %v839_v59  ;;  %v842_v0 = vpop.f32.mrb[2].mxu1 }
 0x100   : > { %v843_v1 = vpop.f32.mrb[3].mxu1 }
 0x101   : > { %v636_v2 = vadd.f32 %v841_v63, %v596_v62 }
 0x10b   : > { %v675_v3 = vpop.f32.mrb[4].mxu0 }
 0x10c   : > { %v676_v4 = vadd.f32 %v675_v3, %v636_v2  ;;  %v860_v5 = vpop.f32.mrb[5].mxu0 }
 0x10d   : > { %v678_v6 = vpop.f32.mrb[6].mxu0 }
 0x10e   : > { %vm681_vm2 = vcmp.ge.f32.partialorder %v676_v4, 0.0  ;;  %v682_v7 = vmul.f32 0.2, %v676_v4  ;;  %v861_v8 = vpop.f32.mrb[7].mxu0 }
 0x110   : > { %v683_v10 = vsel %vm681_vm2, %v676_v4, %v682_v7 }
 0x111   : > { %v684_v12 = vmul.f32 %v683_v10, %v295_v9 }
 0x113   : > { %v685_v14 = vadd.f32 %v684_v12, %v296_v11 }
 0x115   : > { %v687_v15 = vmul.f32 %v686_v13, %v685_v14 }
 0x117   : > { %v689_v16 = vsel %vm688_vm3, %v687_v15, 0.0 }
 0x118   : > { %690 = vadd.xlane.f32.xlu0 %v689_v16 }
 0x1a5   : > { %v691_v17 = vpop.xlane.xlu0 %690 }
 0x1a6   : > { %v692_v18 = vrot.slane %v691_v17, 4 }
 0x1a8   : > { %v693_v19 = vadd.f32 %v692_v18, %v691_v17 }
 0x1aa   : > { %v694_v20 = vrot.slane %v693_v19, 2 }
 0x1ac   : > { %v695_v21 = vadd.f32 %v694_v20, %v693_v19 }
 0x1ae   : > { %v696_v22 = vrot.slane %v695_v21, 1 }
 0x1b0   : > { %v697_v23 = vadd.f32 %v696_v22, %v695_v21 }
 0x1b2   : > { %863 = vpush %v697_v23 }
 0x1e3   : > { %s864_s8 = spop %863 }
 0x1e4   : > { %v700_v25 = vstv %s864_s8 }
 0x1e5   : > { %v701_v26 = vadd.f32 %v700_v25, %v699_v24 }
 0x1e7   : > { %v702_v27 = vsub.f32 0.0, %v701_v26 }
 0x1e9   : > { %v703_v28 = vmul.f32 1.442695, %v702_v27 }
 0x1eb   : > { %913 = vpow2.f32 %v703_v28 }
 0x1f5   : > { %v914_v29 = vpop.eup %913 }
 0x1f6   : > { %v705_v30 = vadd.f32 1.0, %v914_v29 }
 0x1f8   : > { %915 = vrcp.f32 %v705_v30 }
 0x202   : > { %v916_v31 = vpop.eup %915 }
 0x203   : > { %709 = vst.msk [vmem:[%s219_s11] sm:$0x1] %vm708_vm4, %v916_v31 }
 0x204 PF: > { %s17_s20 = sadd.s32 1, %s923_s20  }
 0x205   : > { %p14_p4 = scmp.ge.s32.totalorder %s17_s20, 4  }
 0x207   :  { %16 = sbr.rel (!%p14_p4) target bundleno = 3 (0x3), region = 70 }

</bundles_post_ra>
